<compile_context>
chip_gen: v7x
topology: tpu7x:2x2x1
jax: 0.10.0
libtpu: 0.0.40
codegen_flags: <defaults>
</compile_context>

<pallas_src>
import jax
import jax.numpy as jnp
from jax.experimental import pallas as pl
from jax.experimental.pallas import tpu as pltpu

# Tiling constants (chosen for the v7x VMEM floor; comfortable on v5e/v6e).
_LANES = 2048   # lane (last-dim) width: large multiple of 128 -> unmasked vst
_TM = 512       # rows per tile: multiple of 8


def _silu_kernel(x_ref, o_ref):
    # Elementwise x * sigmoid(x).  Upcast to f32 so exp/divide never run in
    # bf16 (v5e has no bf16 VPU/EUP path); cast back on store.
    x = x_ref[...].astype(jnp.float32)
    y = x * (1.0 / (1.0 + jnp.exp(-x)))   # exact sigmoid; exp goes to the EUP
    o_ref[...] = y.astype(o_ref.dtype)


def _round_up(n, m):
    return ((n + m - 1) // m) * m


def silu_pallas(x):
    """Apply the wrapped module (SiLU) to an arbitrary-shaped tensor."""
    orig_shape = x.shape
    total = x.size

    # Pick a lane width: as close to _LANES as possible while keeping at
    # least ~8 sublanes of real data (avoids huge padding for tiny inputs).
    lanes = _LANES
    while lanes > 128 and total < lanes * 8:
        lanes //= 2

    # Rows needed; round up so the grid divides evenly (no partial blocks,
    # no (8,128) divisibility traps for arbitrary N,C,H,W).
    rows_needed = pl.cdiv(total, lanes)
    if rows_needed <= _TM:
        rows = _round_up(rows_needed, 8)
        tm = rows
    else:
        rows = _round_up(rows_needed, _TM)
        tm = _TM

    padded = rows * lanes
    flat = x.reshape(-1)
    if padded != total:
        flat = jnp.pad(flat, (0, padded - total))
    x2d = flat.reshape(rows, lanes)

    cost = pl.CostEstimate(
        flops=5 * total,
        transcendentals=total,
        bytes_accessed=2 * total * x.dtype.itemsize,
    )

    out2d = pl.pallas_call(
        _silu_kernel,
        out_shape=jax.ShapeDtypeStruct((rows, lanes), x.dtype),
        grid=(rows // tm,),
        in_specs=[pl.BlockSpec((tm, lanes), lambda i: (i, 0))],
        out_specs=pl.BlockSpec((tm, lanes), lambda i: (i, 0)),
        compiler_params=pltpu.CompilerParams(
            dimension_semantics=("parallel",),
        ),
        cost_estimate=cost,
    )(x2d)

    return out2d.reshape(-1)[:total].reshape(orig_shape)


def pass_forward(xs, dim=1):
    """Pallas equivalent of Pass(module=SiLU, dim=dim).forward(xs)."""
    # TODO(synk): `module` is an arbitrary nn.Module in the spec; it is
    # realized here as elementwise SiLU (the Pallas kernel above).
    xs = list(xs)
    xs[dim] = silu_pallas(xs[dim])
    return xs


def pass_forward_ref(xs, dim=1):
    xs = list(xs)
    xs[dim] = xs[dim] * jax.nn.sigmoid(xs[dim])
    return xs


if __name__ == "__main__":
    key = jax.random.PRNGKey(0)
    k0, k1 = jax.random.split(key)

    # A small (coords, features) pair as Pass sees it in a CNP decoder:
    # element 0 passes through, element 1 (dim=1) is transformed.
    x0 = jax.random.normal(k0, (2, 16, 16, 2), dtype=jnp.float32)   # coords
    x1 = jax.random.normal(k1, (2, 4, 16, 16), dtype=jnp.float32)   # features
    xs = (x0, x1)

    out = pass_forward(xs, dim=1)
    out = jax.tree_util.tree_map(jax.block_until_ready, out)

    ref = pass_forward_ref(xs, dim=1)

    # Element 0 must be untouched.
    assert out[0].shape == x0.shape and out[0].dtype == x0.dtype
    assert jnp.array_equal(out[0], x0), "pass-through element was modified"

    # Element 1 must match SiLU reference.
    assert out[1].shape == x1.shape and out[1].dtype == x1.dtype
    assert jnp.allclose(out[1], ref[1], atol=1e-5, rtol=1e-5), "mismatch vs reference"

    print("KERNEL_OK")
</pallas_src>

<mosaic_0001>
module attributes {stable_mosaic.version = 11 : i64} {
  func.func @_silu_kernel(%arg0: i32, %arg1: memref<8x256xf32, #tpu.memory_space<vmem>>, %arg2: memref<8x256xf32, #tpu.memory_space<vmem>>) attributes {dimension_semantics = [#tpu.dimension_semantics<parallel>], iteration_bounds = array<i64: 1>, scalar_prefetch = 0 : i64, scratch_operands = 0 : i64, tpu.core_type = #tpu.core_type<tc>, window_params = [{transform_indices = @transform_0, window_bounds = array<i64: 8, 256>}, {transform_indices = @transform_1, window_bounds = array<i64: 8, 256>}]} {
    %c0 = arith.constant 0 : index
    %c0_0 = arith.constant 0 : index
    %0 = vector.load %arg1[%c0, %c0_0] : memref<8x256xf32, #tpu.memory_space<vmem>>, vector<8x256xf32>
    %cst = arith.constant 0.000000e+00 : f32
    %1 = vector.broadcast %cst : f32 to vector<8x256xf32>
    %2 = arith.subf %1, %0 : vector<8x256xf32>
    %3 = math.exp %2 : vector<8x256xf32>
    %cst_1 = arith.constant 1.000000e+00 : f32
    %4 = vector.broadcast %cst_1 : f32 to vector<8x256xf32>
    %5 = arith.addf %4, %3 : vector<8x256xf32>
    %cst_2 = arith.constant 1.000000e+00 : f32
    %6 = vector.broadcast %cst_2 : f32 to vector<8x256xf32>
    %7 = arith.divf %6, %5 : vector<8x256xf32>
    %8 = arith.mulf %0, %7 : vector<8x256xf32>
    %c0_3 = arith.constant 0 : index
    %c0_4 = arith.constant 0 : index
    %9 = vector.load %arg2[%c0_3, %c0_4] : memref<8x256xf32, #tpu.memory_space<vmem>>, vector<8x256xf32>
    tpu.vector_store %arg2[%c0_3, %c0_4], %8 {strides = array<i32>} : memref<8x256xf32, #tpu.memory_space<vmem>>, vector<8x256xf32>,
    return
  }
  func.func @transform_0(%arg0: i32) -> (i32, i32) {
    %c0_i32 = arith.constant 0 : i32
    %c0_i32_0 = arith.constant 0 : i32
    return %arg0, %c0_i32 : i32, i32
  }
  func.func @transform_1(%arg0: i32) -> (i32, i32) {
    %c0_i32 = arith.constant 0 : i32
    %c0_i32_0 = arith.constant 0 : i32
    return %arg0, %c0_i32 : i32, i32
  }
}

</mosaic_0001>

<bundles_post_ra>
// kernel: tpu_custom_call.1
= control target key start
LH: loop header
LB: loop body
LE: loop exit
PB: predicated region body
PF: predicated region fallthrough
CT: control target
= control target key end

     0   :  { %6 = vsyncpa [#allocation3], 0  ;;  %s148_s0 = inlined_call_operand.hbm [shape: f32[8,256], index: 0, kind: input, shape index: {}]   ;;  %s149_s1 = inlined_call_operand.hbm [shape: f32[8,256], index: 1, kind: output, shape index: {}]  }
   0x1   :  { %7 = vsyncpa [#allocation4], 0  ;;  %s112_s6 = smov [#allocation2]   ;;  %s64_s10 = scalar_lea.hbm %s148_s0, 256 }
   0x2   :  { %s14_s7 = sshll.u32 %s112_s6, 4  ;;  %p65_p0 = scmp.ne.s32.totalorder %s148_s0, %s64_s10  ;;  %s15_s7 = int_to_ptr.vmem [resolvable:$true] %s14_s7 }
   0x3   :  { %p68_p1 = scmp.lt.u32.totalorder %s64_s10, %s148_s0 }
   0x5   :  { %p70_p2 = pnand %p68_p1, %p65_p0 }
   0x7   :  { %73 = shalt.err (!%p70_p2)
}
   0x8   :  { %s74_s15 = scalar_lea.vmem %s15_s7, 256  ;;  %p79_p4 = scmp.lt.s32.totalorder %s15_s7, %s15_s7 }
   0x9   :  { %p75_p3 = scmp.ne.s32.totalorder %s15_s7, %s74_s15  ;;  %p80_p5 = scmp.lt.s32.totalorder %s74_s15, %s74_s15 }
   0xb   :  { %p81_p6 = por %p80_p5, %p79_p4 }
   0xd   :  { %p82_p7 = pnand %p81_p6, %p75_p3 }
   0xf   :  { %85 = shalt.err (!%p82_p7)
}
  0x10   :  { %17 = dma.hbm_to_vmem [thread:$0]  %s148_s0, 256, %s15_s7, [#allocation3]  }
  0x11   :  { %108 = dma.done.wait [#allocation3], 256  }
  0x12   :  { %109 = vsyncadd [#allocation3], 4294967040  ;;  %v21_v0 = vld [vmem:[#allocation2] sm:$0xff]  ;;  %v22_v1 = vld [vmem:[#allocation2 + $0x8] sm:$0xff]  ;;  %s113_s18 = smov [#allocation5]  }
  0x13   :  { %v23_v2 = vsub.f32 0.0, %v21_v0  ;;  %v24_v3 = vsub.f32 0.0, %v22_v1  ;;  %s45_s19 = sshll.u32 %s113_s18, 4  ;;  %s46_s19 = int_to_ptr.vmem [resolvable:$true] %s45_s19 }
  0x14   :  { %s86_s0 = scalar_lea.vmem %s46_s19, 256  ;;  %p91_p9 = scmp.lt.s32.totalorder %s46_s19, %s46_s19 }
  0x15   :  { %v25_v4 = vmul.f32 1.442695, %v23_v2  ;;  %v27_v5 = vmul.f32 1.442695, %v24_v3  ;;  %p87_p8 = scmp.ne.s32.totalorder %s46_s19, %s86_s0  ;;  %p92_p10 = scmp.lt.s32.totalorder %s86_s0, %s86_s0 }
  0x17   :  { %56 = vpow2.f32 %v25_v4  ;;  %p93_p11 = por %p92_p10, %p91_p9 }
  0x18   :  { %58 = vpow2.f32 %v27_v5 }
  0x19   :  { %p94_p12 = pnand %p93_p11, %p87_p8 }
  0x21   :  { %v57_v6 = vpop.eup %56 }
  0x22   :  { %v59_v7 = vpop.eup %58  ;;  %v29_v8 = vadd.f32 1.0, %v57_v6 }
  0x23   :  { %v30_v9 = vadd.f32 1.0, %v59_v7 }
  0x24   :  { %60 = vrcp.f32 %v29_v8 }
  0x25   :  { %62 = vrcp.f32 %v30_v9 }
  0x2e   :  { %v61_v10 = vpop.eup %60 }
  0x2f   :  { %v63_v11 = vpop.eup %62  ;;  %v35_v12 = vmul.f32 %v61_v10, %v21_v0 }
  0x30   :  { %v36_v13 = vmul.f32 %v63_v11, %v22_v1 }
  0x31   :  { %37 = vst [vmem:[#allocation5] sm:$0xff] %v35_v12 }
  0x32   :  { %38 = vst [vmem:[#allocation5 + $0x8] sm:$0xff] %v36_v13 }
  0x33   :  { %97 = shalt.err (!%p94_p12)
}
  0x34   :  { %s98_s22 = scalar_lea.hbm %s149_s1, 256 }
  0x35   :  { %p99_p13 = scmp.ne.s32.totalorder %s149_s1, %s98_s22  ;;  %p102_p0 = scmp.lt.u32.totalorder %s98_s22, %s149_s1 }
  0x37   :  { %p104_p1 = pnand %p102_p0, %p99_p13 }
  0x39   :  { %107 = shalt.err (!%p104_p1)
}
  0x3a   :  { %48 = dma.vmem_to_hbm [thread:$0]  %s46_s19, 256, %s149_s1, [#allocation4]  }
  0x3b   :  { %110 = dma.done.wait [#allocation4], 256  }
  0x3c   :  { %111 = vsyncadd [#allocation4], 4294967040 }
  0x3d   :  { %52 = vsyncpa [#allocation3], 1 }
  0x3e   :  { %53 = vsyncpa [#allocation4], 1 }

</bundles_post_ra>
